<compile_context>
chip_gen: v6e
topology: v6e:2x2x1
jax: 0.10.0
libtpu: 0.0.40
codegen_flags: <defaults>
</compile_context>

<pallas_src>
import functools

import jax
import jax.numpy as jnp
from jax.experimental import pallas as pl
from jax.experimental.pallas import tpu as pltpu

LANE = 128        # TPU vreg lane width (fast axis)
BF16_ROWS = 16    # bf16 rows packed per sublane-pair -> pad M to 16
NEG_INF = -1e30


def _round_up(n, m):
    return ((n + m - 1) // m) * m


def _choose_tiling(batch):
    """Single source of truth for (B_pad, tile_b).

    - batch padded to a multiple of 16 (bf16 sublane packing for the MXU LHS)
    - tile cap 512 rows (well inside the 32 MiB scoped VMEM default everywhere)
    - for B_pad > 32 the grid gets >= 2 steps so the "parallel" axis can be
      sharded across both TensorCores on v7x (free on single-TC v5e/v6e).
    """
    b16 = _round_up(max(int(batch), 1), BF16_ROWS)
    if b16 <= 2 * BF16_ROWS:
        tile_b = b16
    else:
        tile_b = min(512, _round_up((b16 + 1) // 2, BF16_ROWS))
    b_pad = _round_up(b16, tile_b)
    return b_pad, tile_b


def _default_act_dtype():
    """bf16 inter-layer activations on bf16-native VPUs (v6e/v7x); f32 on v5e/older."""
    try:
        kind = jax.devices()[0].device_kind.lower()
    except Exception:
        return jnp.float32
    return jnp.bfloat16 if ("v6" in kind or "v7" in kind) else jnp.float32


# -----------------------------------------------------------------------------
# Fused kernel: whole MLP in one body
# -----------------------------------------------------------------------------
def _mlp_kernel(*refs, num_layers, negative_slope, act_dtype):
    """refs = (x_ref, w_0, c_0, ..., w_{L-1}, c_{L-1}, o_ref).

    Layers 0..L-2: z = x @ W' + c' ; LeakyReLU      (folded Linear+BN, Dropout=id)
    Layer  L-1   : z = x @ W' + c' ; Softmax(-1)    (padded classes carry -1e30 -> prob 0)
    Matmul operands are bf16 (weight dtype); accumulation + softmax math in f32.
    Inter-layer activations are cast once per layer to `act_dtype`.
    """
    x_ref = refs[0]
    o_ref = refs[-1]
    p = refs[1:-1]

    h = x_ref[...]                                   # (TILE_B, F0) matmul dtype
    for l in range(num_layers):
        w = p[2 * l][...]
        c = p[2 * l + 1][...]
        z = jnp.dot(h.astype(w.dtype), w, preferred_element_type=jnp.float32) + c
        if l < num_layers - 1:
            h = jnp.where(z >= 0.0, z, negative_slope * z).astype(act_dtype)
        else:
            m = jnp.max(z, axis=-1, keepdims=True)
            e = jnp.exp(z - m)
            s = jnp.sum(e, axis=-1, keepdims=True)
            o_ref[...] = (e / s).astype(o_ref.dtype)  # exact normalization


def _mlp_forward_padded(x_in, folded, *, tile_b, negative_slope, act_dtype):
    """One pallas_call over the (batch-padded) input; batch tiled on a parallel axis."""
    B_pad, F0 = x_in.shape
    Fout_pad = folded[-1][1].shape[-1]
    num_layers = len(folded)
    assert B_pad % tile_b == 0
    grid = (B_pad // tile_b,)

    in_specs = [pl.BlockSpec((tile_b, F0), lambda i: (i, 0))]
    flat_params = []
    for (w, c) in folded:
        in_specs.append(pl.BlockSpec(w.shape, lambda i: (0, 0)))   # resident weights
        in_specs.append(pl.BlockSpec(c.shape, lambda i: (0, 0)))
        flat_params += [w, c]

    return pl.pallas_call(
        functools.partial(_mlp_kernel, num_layers=num_layers,
                          negative_slope=negative_slope, act_dtype=act_dtype),
        out_shape=jax.ShapeDtypeStruct((B_pad, Fout_pad), jnp.float32),
        grid=grid,
        in_specs=in_specs,
        out_specs=pl.BlockSpec((tile_b, Fout_pad), lambda i: (i, 0)),
        compiler_params=pltpu.CompilerParams(dimension_semantics=("parallel",)),
    )(x_in, *flat_params)


# -----------------------------------------------------------------------------
# Parameters: raw (PyTorch-like) init, then host-side fold + pad
# -----------------------------------------------------------------------------
def init_classifier_params(key, layers):
    """layers = [in_features, hidden..., num_classes]; mimics nn.Linear/BatchNorm1d init."""
    units = []
    for fin, fout in zip(layers[:-2], layers[1:-1]):
        key, kw, kb = jax.random.split(key, 3)
        bound = 1.0 / float(fin) ** 0.5
        w = jax.random.uniform(kw, (fin, fout), jnp.float32, -bound, bound)
        b = jax.random.uniform(kb, (fout,), jnp.float32, -bound, bound)
        bn = dict(gamma=jnp.ones((fout,), jnp.float32),
                  beta=jnp.zeros((fout,), jnp.float32),
                  mean=jnp.zeros((fout,), jnp.float32),
                  var=jnp.ones((fout,), jnp.float32))
        units.append((w, b, bn))
    fin, fout = layers[-2], layers[-1]
    key, kw, kb = jax.random.split(key, 3)
    bound = 1.0 / float(fin) ** 0.5
    w = jax.random.uniform(kw, (fin, fout), jnp.float32, -bound, bound)
    b = jax.random.uniform(kb, (fout,), jnp.float32, -bound, bound)
    return {"units": units, "head": (w, b)}


def fold_and_pad_params(params, *, bn_eps=1e-5, matmul_dtype=jnp.bfloat16):
    """Fold eval-mode BN into (W, c) and pad feature dims for lane-dense kernels.

    unit:  y = LReLU((x@W + b - mean) * gamma/sqrt(var+eps) + beta)
             = LReLU(x @ (W*s) + (b*s + beta - mean*s)),   s = gamma/sqrt(var+eps)
    head:  padded class columns get weight 0 and shift -1e30 (softmax prob exactly 0).
    Layer 0 keeps its real contraction dim (no K padding); every output dim is
    padded to a multiple of 128.  Weights stored in `matmul_dtype`, shifts in f32.
    """
    folded = []
    for (w, b, bn) in params["units"]:
        s = bn["gamma"] / jnp.sqrt(bn["var"] + bn_eps)
        folded.append((w * s[None, :], b * s + bn["beta"] - bn["mean"] * s, 0.0))
    w, b = params["head"]
    folded.append((w, b, NEG_INF))

    padded = []
    for idx, (w_f, c_f, pad_val) in enumerate(folded):
        fin, fout = w_f.shape
        fin_p = fin if idx == 0 else _round_up(fin, LANE)   # layer 0: K unpadded
        fout_p = _round_up(fout, LANE)
        w_p = jnp.zeros((fin_p, fout_p), jnp.float32).at[:fin, :fout].set(w_f)
        c_p = jnp.full((1, fout_p), pad_val, jnp.float32).at[0, :fout].set(c_f)
        padded.append((w_p.astype(matmul_dtype), c_p))
    return padded


# -----------------------------------------------------------------------------
# End-to-end forward (jitted together with the kernel)
# -----------------------------------------------------------------------------
def classifier_forward(folded, *inputs, in_features, num_classes,
                       negative_slope=0.01, act_dtype=None):
    if act_dtype is None:
        act_dtype = _default_act_dtype()
    # Mirrors: x = torch.stack(x).type(torch.FloatTensor); x = x.view(-1, in_features)
    x = jnp.stack(inputs).astype(jnp.float32).reshape(-1, in_features)
    B = x.shape[0]

    B_pad, tile_b = _choose_tiling(B)
    x_in = x.astype(folded[0][0].dtype)            # hand bf16 MXU operand to the kernel
    if B_pad != B:
        x_in = jnp.pad(x_in, ((0, B_pad - B), (0, 0)))   # fusable, no scatter pre-pass

    out_pad = _mlp_forward_padded(x_in, folded, tile_b=tile_b,
                                  negative_slope=negative_slope,
                                  act_dtype=act_dtype)
    return out_pad[:B, :num_classes]


# -----------------------------------------------------------------------------
# Pure-JAX reference (f32 everywhere) for correctness check
# -----------------------------------------------------------------------------
def reference_forward(params, *inputs, in_features, bn_eps=1e-5, negative_slope=0.01):
    x = jnp.stack(inputs).astype(jnp.float32).reshape(-1, in_features)
    for (w, b, bn) in params["units"]:
        z = x @ w + b
        z = (z - bn["mean"]) / jnp.sqrt(bn["var"] + bn_eps) * bn["gamma"] + bn["beta"]
        x = jnp.where(z >= 0.0, z, negative_slope * z)
    w, b = params["head"]
    return jax.nn.softmax(x @ w + b, axis=-1)


# -----------------------------------------------------------------------------
if __name__ == "__main__":
    layers = [32, 64, 64, 10]  # [in_features, hidden, hidden, num_classes]

    key = jax.random.PRNGKey(0)
    key, k1, k2, kp = jax.random.split(key, 4)

    # The module's forward takes *x and stacks them: two (4, 32) tensors -> batch 8.
    x0 = jax.random.normal(k1, (4, layers[0]), jnp.float32)
    x1 = jax.random.normal(k2, (4, layers[0]), jnp.float32)

    raw_params = init_classifier_params(kp, layers)
    folded = fold_and_pad_params(raw_params)                 # host-side, one-time

    fwd = jax.jit(functools.partial(classifier_forward,
                                    in_features=layers[0],
                                    num_classes=layers[-1],
                                    act_dtype=_default_act_dtype()))
    out = jax.block_until_ready(fwd(folded, x0, x1))

    assert out.shape == (8, layers[-1])
    assert bool(jnp.all(jnp.isfinite(out)))
    # Softmax rows sum to 1 (exact divide; only f32 rounding + bf16 matmul noise).
    assert jnp.allclose(jnp.sum(out, axis=-1), 1.0, atol=5e-3)
    # Matches the pure-f32 reference (bf16 MXU operands -> small prob differences).
    ref = reference_forward(raw_params, x0, x1, in_features=layers[0])
    assert jnp.allclose(out, ref, atol=2e-2), float(jnp.max(jnp.abs(out - ref)))

    print("KERNEL_OK")
</pallas_src>

<mosaic_0001>
module attributes {stable_mosaic.version = 11 : i64} {
  func.func @_mlp_kernel(%arg0: i32, %arg1: memref<16x32xbf16, #tpu.memory_space<vmem>>, %arg2: memref<32x128xbf16, #tpu.memory_space<vmem>>, %arg3: memref<1x128xf32, #tpu.memory_space<vmem>>, %arg4: memref<128x128xbf16, #tpu.memory_space<vmem>>, %arg5: memref<1x128xf32, #tpu.memory_space<vmem>>, %arg6: memref<128x128xbf16, #tpu.memory_space<vmem>>, %arg7: memref<1x128xf32, #tpu.memory_space<vmem>>, %arg8: memref<16x128xf32, #tpu.memory_space<vmem>>) attributes {dimension_semantics = [#tpu.dimension_semantics<parallel>], iteration_bounds = array<i64: 1>, scalar_prefetch = 0 : i64, scratch_operands = 0 : i64, tpu.core_type = #tpu.core_type<tc>, window_params = [{transform_indices = @transform_0, window_bounds = array<i64: 16, 32>}, {pipeline_mode = #tpu.pipeline_mode<synchronous>, transform_indices = @transform_1, window_bounds = array<i64: 32, 128>}, {pipeline_mode = #tpu.pipeline_mode<synchronous>, transform_indices = @transform_2, window_bounds = array<i64: 1, 128>}, {pipeline_mode = #tpu.pipeline_mode<synchronous>, transform_indices = @transform_3, window_bounds = array<i64: 128, 128>}, {pipeline_mode = #tpu.pipeline_mode<synchronous>, transform_indices = @transform_4, window_bounds = array<i64: 1, 128>}, {pipeline_mode = #tpu.pipeline_mode<synchronous>, transform_indices = @transform_5, window_bounds = array<i64: 128, 128>}, {pipeline_mode = #tpu.pipeline_mode<synchronous>, transform_indices = @transform_6, window_bounds = array<i64: 1, 128>}, {transform_indices = @transform_7, window_bounds = array<i64: 16, 128>}]} {
    %c0 = arith.constant 0 : index
    %c0_0 = arith.constant 0 : index
    %0 = vector.load %arg1[%c0, %c0_0] : memref<16x32xbf16, #tpu.memory_space<vmem>>, vector<16x32xbf16>
    %c0_1 = arith.constant 0 : index
    %c0_2 = arith.constant 0 : index
    %1 = vector.load %arg2[%c0_1, %c0_2] : memref<32x128xbf16, #tpu.memory_space<vmem>>, vector<32x128xbf16>
    %c0_3 = arith.constant 0 : index
    %c0_4 = arith.constant 0 : index
    %2 = vector.load %arg3[%c0_3, %c0_4] : memref<1x128xf32, #tpu.memory_space<vmem>>, vector<1x128xf32>
    %cst = arith.constant dense<0.000000e+00> : vector<16x128xf32>
    %3 = tpu.matmul %0, %1, %cst {dimension_numbers = #tpu.dot_dimension_numbers<[1], [0], [0], [1], [0, 0, 1, 1], [], []>} : vector<16x32xbf16>, vector<32x128xbf16>, vector<16x128xf32> -> vector<16x128xf32>
    %4 = vector.broadcast %2 : vector<1x128xf32> to vector<16x128xf32>
    %5 = arith.addf %3, %4 : vector<16x128xf32>
    %cst_5 = arith.constant 0.000000e+00 : f32
    %6 = vector.broadcast %cst_5 : f32 to vector<16x128xf32>
    %7 = arith.cmpf oge, %5, %6 : vector<16x128xf32>
    %cst_6 = arith.constant 0.00999999977 : f32
    %8 = vector.broadcast %cst_6 : f32 to vector<16x128xf32>
    %9 = arith.mulf %8, %5 : vector<16x128xf32>
    %10 = arith.select %7, %5, %9 : vector<16x128xi1>, vector<16x128xf32>
    %c0_7 = arith.constant 0 : index
    %c0_8 = arith.constant 0 : index
    %11 = vector.load %arg4[%c0_7, %c0_8] : memref<128x128xbf16, #tpu.memory_space<vmem>>, vector<128x128xbf16>
    %c0_9 = arith.constant 0 : index
    %c0_10 = arith.constant 0 : index
    %12 = vector.load %arg5[%c0_9, %c0_10] : memref<1x128xf32, #tpu.memory_space<vmem>>, vector<1x128xf32>
    %13 = arith.truncf %10 : vector<16x128xf32> to vector<16x128xbf16>
    %cst_11 = arith.constant dense<0.000000e+00> : vector<16x128xf32>
    %14 = tpu.matmul %13, %11, %cst_11 {dimension_numbers = #tpu.dot_dimension_numbers<[1], [0], [0], [1], [0, 0, 1, 1], [], []>} : vector<16x128xbf16>, vector<128x128xbf16>, vector<16x128xf32> -> vector<16x128xf32>
    %15 = vector.broadcast %12 : vector<1x128xf32> to vector<16x128xf32>
    %16 = arith.addf %14, %15 : vector<16x128xf32>
    %cst_12 = arith.constant 0.000000e+00 : f32
    %17 = vector.broadcast %cst_12 : f32 to vector<16x128xf32>
    %18 = arith.cmpf oge, %16, %17 : vector<16x128xf32>
    %cst_13 = arith.constant 0.00999999977 : f32
    %19 = vector.broadcast %cst_13 : f32 to vector<16x128xf32>
    %20 = arith.mulf %19, %16 : vector<16x128xf32>
    %21 = arith.select %18, %16, %20 : vector<16x128xi1>, vector<16x128xf32>
    %c0_14 = arith.constant 0 : index
    %c0_15 = arith.constant 0 : index
    %22 = vector.load %arg6[%c0_14, %c0_15] : memref<128x128xbf16, #tpu.memory_space<vmem>>, vector<128x128xbf16>
    %c0_16 = arith.constant 0 : index
    %c0_17 = arith.constant 0 : index
    %23 = vector.load %arg7[%c0_16, %c0_17] : memref<1x128xf32, #tpu.memory_space<vmem>>, vector<1x128xf32>
    %24 = arith.truncf %21 : vector<16x128xf32> to vector<16x128xbf16>
    %cst_18 = arith.constant dense<0.000000e+00> : vector<16x128xf32>
    %25 = tpu.matmul %24, %22, %cst_18 {dimension_numbers = #tpu.dot_dimension_numbers<[1], [0], [0], [1], [0, 0, 1, 1], [], []>} : vector<16x128xbf16>, vector<128x128xbf16>, vector<16x128xf32> -> vector<16x128xf32>
    %26 = vector.broadcast %23 : vector<1x128xf32> to vector<16x128xf32>
    %27 = arith.addf %25, %26 : vector<16x128xf32>
    %cst_19 = arith.constant dense<0xFF800000> : vector<16xf32>
    %28 = vector.multi_reduction <maximumf>, %27, %cst_19 [1] : vector<16x128xf32> to vector<16xf32>
    %29 = vector.shape_cast %28 : vector<16xf32> to vector<16x1xf32>
    %30 = vector.broadcast %29 : vector<16x1xf32> to vector<16x128xf32>
    %31 = arith.subf %27, %30 : vector<16x128xf32>
    %32 = math.exp %31 : vector<16x128xf32>
    %cst_20 = arith.constant dense<0.000000e+00> : vector<16xf32>
    %33 = vector.multi_reduction <add>, %32, %cst_20 [1] : vector<16x128xf32> to vector<16xf32>
    %34 = vector.shape_cast %33 : vector<16xf32> to vector<16x1xf32>
    %35 = vector.broadcast %34 : vector<16x1xf32> to vector<16x128xf32>
    %36 = arith.divf %32, %35 : vector<16x128xf32>
    %c0_21 = arith.constant 0 : index
    %c0_22 = arith.constant 0 : index
    %37 = vector.load %arg8[%c0_21, %c0_22] : memref<16x128xf32, #tpu.memory_space<vmem>>, vector<16x128xf32>
    tpu.vector_store %arg8[%c0_21, %c0_22], %36 {strides = array<i32>} : memref<16x128xf32, #tpu.memory_space<vmem>>, vector<16x128xf32>,
    return
  }
  func.func @transform_0(%arg0: i32) -> (i32, i32) {
    %c0_i32 = arith.constant 0 : i32
    %c0_i32_0 = arith.constant 0 : i32
    return %arg0, %c0_i32 : i32, i32
  }
  func.func @transform_1(%arg0: i32) -> (i32, i32) {
    %c0_i32 = arith.constant 0 : i32
    %c0_i32_0 = arith.constant 0 : i32
    %c0_i32_1 = arith.constant 0 : i32
    return %c0_i32, %c0_i32_0 : i32, i32
  }
  func.func @transform_2(%arg0: i32) -> (i32, i32) {
    %c0_i32 = arith.constant 0 : i32
    %c0_i32_0 = arith.constant 0 : i32
    %c0_i32_1 = arith.constant 0 : i32
    return %c0_i32, %c0_i32_0 : i32, i32
  }
  func.func @transform_3(%arg0: i32) -> (i32, i32) {
    %c0_i32 = arith.constant 0 : i32
    %c0_i32_0 = arith.constant 0 : i32
    %c0_i32_1 = arith.constant 0 : i32
    return %c0_i32, %c0_i32_0 : i32, i32
  }
  func.func @transform_4(%arg0: i32) -> (i32, i32) {
    %c0_i32 = arith.constant 0 : i32
    %c0_i32_0 = arith.constant 0 : i32
    %c0_i32_1 = arith.constant 0 : i32
    return %c0_i32, %c0_i32_0 : i32, i32
  }
  func.func @transform_5(%arg0: i32) -> (i32, i32) {
    %c0_i32 = arith.constant 0 : i32
    %c0_i32_0 = arith.constant 0 : i32
    %c0_i32_1 = arith.constant 0 : i32
    return %c0_i32, %c0_i32_0 : i32, i32
  }
  func.func @transform_6(%arg0: i32) -> (i32, i32) {
    %c0_i32 = arith.constant 0 : i32
    %c0_i32_0 = arith.constant 0 : i32
    %c0_i32_1 = arith.constant 0 : i32
    return %c0_i32, %c0_i32_0 : i32, i32
  }
  func.func @transform_7(%arg0: i32) -> (i32, i32) {
    %c0_i32 = arith.constant 0 : i32
    %c0_i32_0 = arith.constant 0 : i32
    return %arg0, %c0_i32 : i32, i32
  }
}

</mosaic_0001>

<bundles_post_ra>
// kernel: classifier_forward.1
= control target key start
LH: loop header
LB: loop body
LE: loop exit
PB: predicated region body
PF: predicated region fallthrough
CT: control target
= control target key end

     0   :  { %12 = vsyncpa [#allocation3], 0  ;;  %s663_s0 = inlined_call_operand.vmem [shape: bf16[16,32], index: 0, kind: input, shape index: {}]   ;;  %s664_s1 = inlined_call_operand.vmem [shape: bf16[32,128], index: 1, kind: input, shape index: {}]   ;;  %s665_s2 = inlined_call_operand.vmem [shape: f32[1,128], index: 2, kind: input, shape index: {}]   ;;  %s666_s3 = inlined_call_operand.hbm [shape: bf16[128,128], index: 3, kind: input, shape index: {}]   ;;  %s667_s4 = inlined_call_operand.vmem [shape: f32[1,128], index: 4, kind: input, shape index: {}]   ;;  %s668_s5 = inlined_call_operand.hbm [shape: bf16[128,128], index: 5, kind: input, shape index: {}]   ;;  %s669_s6 = inlined_call_operand.vmem [shape: f32[1,128], index: 6, kind: input, shape index: {}]   ;;  %s670_s7 = inlined_call_operand.vmem [shape: f32[16,128], index: 7, kind: output, shape index: {}]  }
   0x1   :  { %13 = vsyncpa [#allocation5], 0  ;;  %s563_s24 = smov [#allocation2]  }
   0x2   :  { %s25_s25 = sshll.u32 %s563_s24, 4  ;;  %s26_s25 = int_to_ptr.vmem [resolvable:$true] %s25_s25 }
   0x3   :  { %s527_s26 = scalar_lea.vmem %s26_s25, 1024  ;;  %p532_p1 = scmp.lt.s32.totalorder %s26_s25, %s26_s25 }
   0x4   :  { %p528_p0 = scmp.ne.s32.totalorder %s26_s25, %s527_s26  ;;  %p533_p2 = scmp.lt.s32.totalorder %s527_s26, %s527_s26 }
   0x6   :  { %p534_p3 = por %p533_p2, %p532_p1 }
   0x8   :  { %p535_p4 = pnand %p534_p3, %p528_p0 }
   0xa   :  { %538 = shalt.err (!%p535_p4)
}
   0xb   :  { %s564_s27 = smov 64   ;;  %s565_s28 = smov 4  }
   0xc   :  { %31 = dma.hbm_to_vmem [thread:$0]  %s666_s3, 1024, %s26_s25, [#allocation3], %s564_s27, %s564_s27, %s565_s28  }
   0xd   :  { %s566_s8 = smov [#allocation4]  }
   0xe   :  { %s39_s9 = sshll.u32 %s566_s8, 4  ;;  %s40_s9 = int_to_ptr.vmem [resolvable:$true] %s39_s9 }
   0xf   :  { %s547_s10 = scalar_lea.vmem %s40_s9, 1024  ;;  %p552_p6 = scmp.lt.s32.totalorder %s40_s9, %s40_s9 }
  0x10   :  { %p548_p5 = scmp.ne.s32.totalorder %s40_s9, %s547_s10  ;;  %p553_p7 = scmp.lt.s32.totalorder %s547_s10, %s547_s10 }
  0x12   :  { %p554_p8 = por %p553_p7, %p552_p6 }
  0x14   :  { %p555_p9 = pnand %p554_p8, %p548_p5 }
  0x16   :  { %558 = shalt.err (!%p555_p9)
}
  0x17   :  { %45 = dma.hbm_to_vmem [thread:$0]  %s668_s5, 1024, %s40_s9, [#allocation5], %s564_s27, %s564_s27, %s565_s28  }
  0x18   :  { %559 = dma.done.wait [#allocation3], 1024  }
  0x19   :  { %560 = vsyncadd [#allocation3], 4294966272 }
  0x1a   :  { %561 = dma.done.wait [#allocation5], 1024  }
  0x1b   :  { %562 = vsyncadd [#allocation5], 4294966272  ;;  %v567_v0 = vmov 0.0   ;;  %vm568_vm0 = vmmov 0   ;;  %v492_v1 = vld [vmem:[%s664_s1 + $0x8] sm:$0xff]   ;;  %v493_v2 = vld [vmem:[%s664_s1] sm:$0xff]  }
  0x1c   :  { %438 = vmatprep.subr.bf16.mxu0 %v567_v0  ;;  %442 = vmatprep.mubr.msk.bf16.mxu0 %vm568_vm0, %v567_v0  ;;  %v495_v3 = vld [vmem:[#allocation2 + $0x38] sm:$0xff]   ;;  %v494_v4 = vld [vmem:[%s663_s0] sm:$0xff]   ;;  %v496_v5 = vld [vmem:[#allocation2 + $0x30] sm:$0xff]   ;;  %vm85_vm1 = vcmask 261120  }
  0x1d   :  { %446 = vmatprep.subr.bf16.mxu1 %v567_v0  ;;  %462 = vmatprep.mubr.msk.bf16.mxu1 %vm568_vm0, %v567_v0  ;;  %v497_v6 = vld [vmem:[#allocation2 + $0x28] sm:$0xff]   ;;  %v498_v7 = vld [vmem:[#allocation2 + $0x20] sm:$0xff]   ;;  %v499_v8 = vld [vmem:[#allocation2 + $0x18] sm:$0xff]  }
  0x1e   :  { %439 = vmatpush3.bf16.msra.mxu0 %v492_v1  ;;  %447 = vmatpush3.bf16.msra.mxu1 %v495_v3  ;;  %v500_v9 = vld [vmem:[#allocation2 + $0x10] sm:$0xff]   ;;  %v501_v10 = vld [vmem:[#allocation2 + $0x8] sm:$0xff]   ;;  %v502_v11 = vld [vmem:[#allocation2] sm:$0xff]  }
  0x1f   :  { %440 = vmatprep.subr.bf16.mxu0 %v567_v0  ;;  %448 = vmatprep.subr.bf16.mxu1 %v567_v0  ;;  %v503_v12 = vld [vmem:[#allocation4 + $0x38] sm:$0xff]   ;;  %v504_v13 = vld [vmem:[#allocation4 + $0x30] sm:$0xff]   ;;  %v505_v14 = vld [vmem:[#allocation4 + $0x28] sm:$0xff]  }
  0x20   :  { %v506_v15 = vld [vmem:[#allocation4 + $0x20] sm:$0xff]   ;;  %v507_v16 = vld [vmem:[#allocation4 + $0x18] sm:$0xff]   ;;  %v508_v29 = vld [vmem:[#allocation4 + $0x10] sm:$0xff]  }
  0x21   :  { %v394_v17 = vld [vmem:[%s665_s2] ss:$0 sm:$0xff]  ;;  %v509_v30 = vld [vmem:[#allocation4 + $0x8] sm:$0xff]  }
  0x22   :  { %441 = vmatpush3.bf16.msra.mxu0 %v493_v2  ;;  %449 = vmatpush3.bf16.msra.mxu1 %v496_v5  ;;  %v510_v31 = vld [vmem:[#allocation4] sm:$0xff]  }
  0x23   :  { %466 = vmatprep.subr.bf16.mxu0 %v567_v0  ;;  %450 = vmatprep.subr.bf16.mxu1 %v567_v0  ;;  %v399_v32 = vld [vmem:[%s667_s4] ss:$0 sm:$0xff] }
  0x24   :  { %v408_v44 = vld [vmem:[%s669_s6] ss:$0 sm:$0xff] }
  0x25   :  { %443 = vmatmul.mubr.msk.bf16.vlgmr.msra.gmra.mxu0 %vm85_vm1, %v494_v4 }
  0x26   :  { %482 = vmatprep.mubr.msk.bf16.mxu0 %vm568_vm0, %v567_v0  ;;  %451 = vmatpush3.bf16.msra.mxu1 %v497_v6 }
  0x27   :  { %452 = vmatprep.subr.bf16.mxu1 %v567_v0  ;;  %467 = vmatpush3.bf16.msra.mxu0 %v503_v12 }
  0x28   :  { %468 = vmatprep.subr.bf16.mxu0 %v567_v0 }
  0x2a   :  { %453 = vmatpush3.bf16.msra.mxu1 %v498_v7 }
  0x2b   :  { %454 = vmatprep.subr.bf16.mxu1 %v567_v0  ;;  %469 = vmatpush3.bf16.msra.mxu0 %v504_v13 }
  0x2c   :  { %470 = vmatprep.subr.bf16.mxu0 %v567_v0 }
  0x2e   :  { %455 = vmatpush3.bf16.msra.mxu1 %v499_v8 }
  0x2f   :  { %456 = vmatprep.subr.bf16.mxu1 %v567_v0  ;;  %471 = vmatpush3.bf16.msra.mxu0 %v505_v14 }
  0x30   :  { %472 = vmatprep.subr.bf16.mxu0 %v567_v0 }
  0x32   :  { %457 = vmatpush3.bf16.msra.mxu1 %v500_v9 }
  0x33   :  { %458 = vmatprep.subr.bf16.mxu1 %v567_v0  ;;  %473 = vmatpush3.bf16.msra.mxu0 %v506_v15 }
  0x34   :  { %474 = vmatprep.subr.bf16.mxu0 %v567_v0 }
  0x36   :  { %459 = vmatpush3.bf16.msra.mxu1 %v501_v10 }
  0x37   :  { %460 = vmatprep.subr.bf16.mxu1 %v567_v0  ;;  %475 = vmatpush3.bf16.msra.mxu0 %v507_v16 }
  0x38   :  { %476 = vmatprep.subr.bf16.mxu0 %v567_v0 }
  0x3a   :  { %461 = vmatpush3.bf16.msra.mxu1 %v502_v11 }
  0x3b   :  { %477 = vmatpush3.bf16.msra.mxu0 %v508_v29 }
  0x3c   :  { %478 = vmatprep.subr.bf16.mxu0 %v567_v0 }
  0x3f   :  { %479 = vmatpush3.bf16.msra.mxu0 %v509_v30 }
  0x40   :  { %480 = vmatprep.subr.bf16.mxu0 %v567_v0 }
  0x43   :  { %481 = vmatpush3.bf16.msra.mxu0 %v510_v31 }
  0xe5   :  { %v123_v18 = vpop.f32.mrf.mxu0 }
  0xe6   :  { %v124_v19 = vadd.f32 %v394_v17, %v123_v18 }
  0xe7   :  { %v444_v20 = vpop.f32.mrf.mxu0 }
  0xe8   :  { %v132_v22 = vmul.f32 0.01, %v124_v19  ;;  %vm130_vm2 = vcmp.ge.f32.partialorder %v124_v19, 0.0 }
  0xe9   :  { %v126_v21 = vpop.f32.mrf.mxu0 }
  0xea   :  { %v127_v23 = vadd.f32 %v394_v17, %v126_v21  ;;  %v134_v26 = vsel %vm130_vm2, %v124_v19, %v132_v22 }
  0xeb   :  { %v445_v24 = vpop.f32.mrf.mxu0 }
  0xec   :  { %vm131_vm3 = vcmp.ge.f32.partialorder %v127_v23, 0.0  ;;  %v133_v25 = vmul.f32 0.01, %v127_v23 }
  0xee   :  { %v135_v27 = vsel %vm131_vm3, %v127_v23, %v133_v25 }
  0xef   :  { %v153_v28 = vpack.c.bf16 %v135_v27, %v134_v26 }
  0xf1   :  { %463 = vmatmul.mubr.bf16.vlgmr.msra.gmra.mxu1 %v153_v28 }
 0x1b1   :  { %v242_v33 = vpop.f32.mrf.mxu1 }
 0x1b2   :  { %v243_v34 = vadd.f32 %v399_v32, %v242_v33 }
 0x1b3   :  { %v464_v35 = vpop.f32.mrf.mxu1 }
 0x1b4   :  { %v251_v37 = vmul.f32 0.01, %v243_v34  ;;  %vm249_vm4 = vcmp.ge.f32.partialorder %v243_v34, 0.0 }
 0x1b5   :  { %v245_v36 = vpop.f32.mrf.mxu1 }
 0x1b6   :  { %v246_v38 = vadd.f32 %v399_v32, %v245_v36  ;;  %v253_v41 = vsel %vm249_vm4, %v243_v34, %v251_v37 }
 0x1b7   :  { %v465_v39 = vpop.f32.mrf.mxu1 }
 0x1b8   :  { %vm250_vm5 = vcmp.ge.f32.partialorder %v246_v38, 0.0  ;;  %v252_v40 = vmul.f32 0.01, %v246_v38 }
 0x1ba   :  { %v254_v42 = vsel %vm250_vm5, %v246_v38, %v252_v40 }
 0x1bb   :  { %v272_v43 = vpack.c.bf16 %v254_v42, %v253_v41 }
 0x1bd   :  { %483 = vmatmul.mubr.bf16.vlgmr.msra.gmra.mxu0 %v272_v43 }
 0x27d   :  { %v361_v45 = vpop.f32.mrf.mxu0 }
 0x27e   :  { %v362_v46 = vadd.f32 %v408_v44, %v361_v45 }
 0x27f   :  { %v484_v47 = vpop.f32.mrf.mxu0 }
 0x280   :  { %368 = vmax.xlane.f32.xlu0 %v362_v46 }
 0x281   :  { %v364_v48 = vpop.f32.mrf.mxu0 }
 0x282   :  { %v365_v49 = vadd.f32 %v408_v44, %v364_v48 }
 0x283   :  { %v485_v50 = vpop.f32.mrf.mxu0 }
 0x284   :  { %370 = vmax.xlane.f32.xlu0 %v365_v49 }
 0x309   :  { %v369_v51 = vpop.xlane.xlu0 %368 }
 0x30a   :  { %v372_v52 = vsub.f32 %v362_v46, %v369_v51 }
 0x30c   :  { %v374_v53 = vmul.f32 1.442695, %v372_v52 }
 0x30d   :  { %v371_v54 = vpop.xlane.xlu0 %370 }
 0x30e   :  { %511 = vpow2.f32 %v374_v53  ;;  %v373_v55 = vsub.f32 %v365_v49, %v371_v54 }
 0x310   :  { %v376_v56 = vmul.f32 1.442695, %v373_v55 }
 0x312   :  { %513 = vpow2.f32 %v376_v56 }
 0x31b   :  { %v512_v57 = vpop.eup %511 }
 0x31c   :  { %378 = vadd.xlane.f32.xlu1 %v512_v57 }
 0x31f   :  { %v514_v58 = vpop.eup %513 }
 0x320   :  { %380 = vadd.xlane.f32.xlu1 %v514_v58 }
 0x3a5   :  { %v379_v59 = vpop.xlane.xlu1 %378 }
 0x3a6   :  { %515 = vrcp.f32 %v379_v59 }
 0x3a9   :  { %v381_v60 = vpop.xlane.xlu1 %380 }
 0x3aa   :  { %517 = vrcp.f32 %v381_v60 }
 0x3b3   :  { %v516_v61 = vpop.eup %515 }
 0x3b4   :  { %v383_v62 = vmul.f32 %v516_v61, %v512_v57 }
 0x3b6   :  { %386 = vst [vmem:[%s670_s7] sm:$0xff] %v383_v62 }
 0x3b7   :  { %v518_v63 = vpop.eup %517 }
 0x3b8   :  { %v385_v0 = vmul.f32 %v518_v63, %v514_v58 }
 0x3ba   :  { %387 = vst [vmem:[%s670_s7 + $0x8] sm:$0xff] %v385_v0 }
 0x3bb   :  { %392 = vsyncpa [#allocation3], 1 }
 0x3bc   :  { %393 = vsyncpa [#allocation5], 1 }

</bundles_post_ra>
